<compile_context>
chip_gen: v7x
topology: tpu7x:2x2x1
jax: 0.10.0
libtpu: 0.0.40
codegen_flags: <defaults>
</compile_context>

<pallas_src>
import math
import functools

import jax
import jax.numpy as jnp
from jax.experimental import pallas as pl
from jax.experimental.pallas import tpu as pltpu

EXP_SCALE = 10.0   # LorentzLinear scale param = log(10) -> .exp() = 10
EPS = 0.5          # H2Conv.eps initial value
C = 1.0            # curvature args.c ; manifold k = 1/c = 1
LANE = 128


# ------------------------------ helpers -------------------------------------
def _round_up(x, m):
    return ((x + m - 1) // m) * m


def _row_tile(n, max_tile=256):
    """(row tile, padded row count) for an n-row array (bf16-safe: mult of 16)."""
    n_pad = _round_up(max(n, 16), 16)
    if n_pad >= max_tile:
        return max_tile, _round_up(n_pad, max_tile)
    return n_pad, n_pad


def _pad2d(a, rows, cols, dtype=None):
    out = jnp.pad(a, ((0, rows - a.shape[0]), (0, cols - a.shape[1])))
    return out.astype(dtype) if dtype is not None else out


def _lorentz_renorm(y, exp_scale):
    """LorentzLinear time/space rescale (all math in f32)."""
    col = jax.lax.broadcasted_iota(jnp.int32, y.shape, 1)
    time = 1.0 / (1.0 + jnp.exp(-y[:, 0:1])) * exp_scale + 1.1   # sigmoid*10 + 1.1
    sq = jnp.sum(jnp.where(col == 0, 0.0, y * y), axis=-1, keepdims=True)
    scale = (time * time - 1.0) / jnp.maximum(sq, 1e-8)
    return jnp.where(col == 0, time, y * jnp.sqrt(scale))


# ------------------ kernel 1: expmap0 fused with first LorentzLinear --------
def _prologue_kernel(x_ref, w_ref, o_ref, *, exp_scale):
    u = x_ref[...]                                           # f32, time col == 0
    col = jax.lax.broadcasted_iota(jnp.int32, u.shape, 1)
    space = jnp.where(col == 0, 0.0, u)
    nrm = jnp.sqrt(jnp.maximum(
        jnp.sum(space * space, axis=-1, keepdims=True), 1e-16))
    e = jnp.exp(nrm)                                         # single exp
    sinh = 0.5 * (e - pl.reciprocal(e, approx=True))
    space_o = sinh * space / nrm
    time = jnp.sqrt(1.0 + jnp.sum(space_o * space_o, axis=-1, keepdims=True))
    h = jnp.where(col == 0, time, space_o)                   # point on hyperboloid
    y = jnp.dot(h.astype(jnp.bfloat16), w_ref[...],
                preferred_element_type=jnp.float32)
    o_ref[...] = _lorentz_renorm(y, exp_scale)


def _prologue(xp, w0_bf16, tm):
    n_pad, din_p = xp.shape
    dout_p = w0_bf16.shape[1]
    return pl.pallas_call(
        functools.partial(_prologue_kernel, exp_scale=EXP_SCALE),
        out_shape=jax.ShapeDtypeStruct((n_pad, dout_p), jnp.float32),
        grid=(n_pad // tm,),
        in_specs=[pl.BlockSpec((tm, din_p), lambda i: (i, 0)),
                  pl.BlockSpec((din_p, dout_p), lambda i: (0, 0))],
        out_specs=pl.BlockSpec((tm, dout_p), lambda i: (i, 0)),
        compiler_params=pltpu.CompilerParams(
            dimension_semantics=("parallel",)),
    )(xp, w0_bf16)


# ------------------ kernel 2: hyperedge aggregation + Lorentz renorm --------
def _edge_kernel(hve_ref, y_ref, xe_ref, acc_ref, *, inv_sqrt_c):
    k = pl.program_id(1)

    @pl.when(k == 0)
    def _():
        acc_ref[...] = jnp.zeros_like(acc_ref)

    # Xe[e] = sum_{i: edges[i]==e} X[vertex[i]]  ==  H_ve @ X   (bf16 MXU, f32 acc)
    acc_ref[...] += jnp.dot(hve_ref[...], y_ref[...].astype(jnp.bfloat16),
                            preferred_element_type=jnp.float32)

    @pl.when(k == pl.num_programs(1) - 1)
    def _():
        xe = acc_ref[...]
        col = jax.lax.broadcasted_iota(jnp.int32, xe.shape, 1)
        sgn = jnp.where(col == 0, -1.0, 1.0)
        inner = jnp.sum(sgn * xe * xe, axis=-1, keepdims=True)   # <Xe,Xe>_L
        denom = jnp.sqrt(jnp.maximum(jnp.abs(inner), 1e-8))      # |-inner|
        xe_ref[...] = xe / (denom * inv_sqrt_c)


def _edge_stage(hve_bf16, y, te, tkn, inv_sqrt_c):
    e_pad, n_pad = hve_bf16.shape
    d_pad = y.shape[1]
    return pl.pallas_call(
        functools.partial(_edge_kernel, inv_sqrt_c=inv_sqrt_c),
        out_shape=jax.ShapeDtypeStruct((e_pad, d_pad), jnp.float32),
        grid=(e_pad // te, n_pad // tkn),
        in_specs=[pl.BlockSpec((te, tkn), lambda e, k: (e, k)),
                  pl.BlockSpec((tkn, d_pad), lambda e, k: (k, 0))],
        out_specs=pl.BlockSpec((te, d_pad), lambda e, k: (e, 0)),
        scratch_shapes=[pltpu.VMEM((te, d_pad), jnp.float32)],
        compiler_params=pltpu.CompilerParams(
            dimension_semantics=("parallel", "arbitrary")),
    )(hve_bf16, y)


# ------ kernel 3: vertex aggregation + residual, fused with next linear -----
# ------            (or with the Lorentz classifier + log_softmax)       -----
def _vertex_kernel(hev_ref, xe_ref, y_ref, w_ref, o_ref, acc_ref, *,
                   eps, exp_scale, mode, nclass):
    k = pl.program_id(1)

    @pl.when(k == 0)
    def _():
        acc_ref[...] = jnp.zeros_like(acc_ref)

    # Xv[v] = sum_{i: vertex[i]==v} Xe[edges[i]]  ==  H_ev @ Xe
    acc_ref[...] += jnp.dot(hev_ref[...], xe_ref[...].astype(jnp.bfloat16),
                            preferred_element_type=jnp.float32)

    @pl.when(k == pl.num_programs(1) - 1)
    def _():
        xnew = eps * acc_ref[...] + y_ref[...]                 # eps*Xv + X
        if mode == "linear":
            z = jnp.dot(xnew.astype(jnp.bfloat16), w_ref[...],
                        preferred_element_type=jnp.float32)
            o_ref[...] = _lorentz_renorm(z, exp_scale)
        else:  # classifier head: 2 + 2*cinner(X, cls) -> log_softmax
            col = jax.lax.broadcasted_iota(jnp.int32, xnew.shape, 1)
            xt = jnp.where(col == 0, -xnew, xnew)              # negate time coord
            logits = 2.0 + 2.0 * jnp.dot(xt.astype(jnp.bfloat16), w_ref[...],
                                         preferred_element_type=jnp.float32)
            ccol = jax.lax.broadcasted_iota(jnp.int32, logits.shape, 1)
            logits = jnp.where(ccol < nclass, logits, -1e30)   # mask lane padding
            m = jnp.max(logits, axis=-1, keepdims=True)
            zl = logits - m
            o_ref[...] = zl - jnp.log(jnp.sum(jnp.exp(zl), axis=-1, keepdims=True))


def _vertex_stage(hev_bf16, xe, y, w_bf16, tm, tke, mode, nclass, eps):
    n_pad, e_pad = hev_bf16.shape
    d_pad = y.shape[1]
    dout_p = w_bf16.shape[1]
    return pl.pallas_call(
        functools.partial(_vertex_kernel, eps=eps, exp_scale=EXP_SCALE,
                          mode=mode, nclass=nclass),
        out_shape=jax.ShapeDtypeStruct((n_pad, dout_p), jnp.float32),
        grid=(n_pad // tm, e_pad // tke),
        in_specs=[pl.BlockSpec((tm, tke), lambda i, k: (i, k)),
                  pl.BlockSpec((tke, d_pad), lambda i, k: (k, 0)),
                  pl.BlockSpec((tm, d_pad), lambda i, k: (i, 0)),
                  pl.BlockSpec((d_pad, dout_p), lambda i, k: (0, 0))],
        out_specs=pl.BlockSpec((tm, dout_p), lambda i, k: (i, 0)),
        scratch_shapes=[pltpu.VMEM((tm, d_pad), jnp.float32)],
        compiler_params=pltpu.CompilerParams(
            dimension_semantics=("parallel", "arbitrary")),
    )(hev_bf16, xe, y, w_bf16)


# ----------------------------- full forward ---------------------------------
def h2gcn_forward(X, lin_weights_t, cls_t, vertex, edges, n_edges,
                  *, eps=EPS, c=C):
    n, nfeat = X.shape
    din = nfeat + 1                          # +1 Lorentz time dim
    dh = lin_weights_t[0].shape[1]           # heads * (nhid + 1)
    nclass = cls_t.shape[1]

    tm, n_pad = _row_tile(n)                 # node-row tile / padded node count
    te, e_pad = _row_tile(n_edges)           # edge-row tile / padded edge count
    din_p = _round_up(din, LANE)
    dh_p = _round_up(dh, LANE)
    c_p = _round_up(nclass, LANE)

    # prepend time coordinate = 0, pad rows + lanes ONCE up front
    xp = jnp.zeros((n_pad, din_p), jnp.float32).at[:n, 1:1 + nfeat].set(X)

    # dense incidence matrices in bf16 (integer counts are exact in bf16).
    # TODO(synk): for genuinely sparse hypergraphs replace the dense H_ve / H_ev
    #             matmuls with a PrefetchScalarGridSpec CSR gather/scatter.
    hve = jnp.zeros((e_pad, n_pad), jnp.float32).at[edges, vertex].add(1.0)
    hve = hve.astype(jnp.bfloat16)           # (E_pad, N_pad)
    hev = hve.T                              # (N_pad, E_pad)

    # pad + cast weights once (pre-transposed: (din, dout))
    w0 = _pad2d(lin_weights_t[0], din_p, dh_p, jnp.bfloat16)
    ws = [_pad2d(w, dh_p, dh_p, jnp.bfloat16) for w in lin_weights_t[1:]]
    cls_p = _pad2d(cls_t, dh_p, c_p, jnp.bfloat16)

    inv_sqrt_c = math.sqrt(1.0 / c)
    nconv = len(lin_weights_t)

    # expmap0 + first LorentzLinear (fused)
    y = _prologue(xp, w0, tm)
    for l in range(nconv):
        # hyperedge scatter-sum + Lorentz renorm
        xe = _edge_stage(hve, y, te, tm, inv_sqrt_c)
        if l < nconv - 1:
            # vertex scatter-sum + residual, fused with the NEXT LorentzLinear
            y = _vertex_stage(hev, xe, y, ws[l], tm, te, "linear", nclass, eps)
        else:
            # last layer: vertex scatter-sum + residual, fused with classifier
            y = _vertex_stage(hev, xe, y, cls_p, tm, te, "classify", nclass, eps)
        # dropout is identity at inference; Lorentz branch applies no activation

    return y[:n, :nclass]


if __name__ == "__main__":
    key = jax.random.PRNGKey(0)
    # small hypergraph: 12 nodes, 6 hyperedges, 4 incidences per hyperedge
    N, ECNT, NNZ = 12, 6, 24
    nfeat, nhid, nclass, nlayer, nhead = 8, 8, 5, 3, 2
    nfeat_l, nhid_l = nfeat + 1, nhid + 1    # Lorentz: +1 time dim

    # conv linear dims: first conv nfeat_l -> nhead*nhid_l, then hidden convs
    dims = [(nfeat_l, nhead * nhid_l)] + \
           [(nhid_l * nhead, nhead * nhid_l)] * (nlayer - 2)
    keys = jax.random.split(key, len(dims) + 3)

    lin_weights_t = []
    for (din, dout), k in zip(dims, keys[:len(dims)]):
        stdv = 1.0 / math.sqrt(dout)
        w = jax.random.uniform(k, (dout, din), jnp.float32, -stdv, stdv)
        lin_weights_t.append(w.T)            # pre-transposed (din, dout)

    cls = jax.random.normal(keys[-3], (nclass, nhid_l * nhead), jnp.float32) \
        / math.sqrt(nhid_l * nhead)
    cls_t = cls.T                            # (dh, nclass)

    X = jax.random.normal(keys[-2], (N, nfeat), jnp.float32)
    vertex = jax.random.randint(keys[-1], (NNZ,), 0, N, dtype=jnp.int32)
    edges = jnp.repeat(jnp.arange(ECNT, dtype=jnp.int32), NNZ // ECNT)

    out = h2gcn_forward(X, lin_weights_t, cls_t, vertex, edges, ECNT)
    out = jax.block_until_ready(out)
    assert out.shape == (N, nclass)
    assert bool(jnp.all(jnp.isfinite(out)))
    # rows of log_softmax must sum to ~1 in prob space
    assert bool(jnp.allclose(jnp.sum(jnp.exp(out), axis=1), 1.0, atol=1e-4))
    print("KERNEL_OK")
</pallas_src>

<mosaic_0001>
module attributes {stable_mosaic.version = 11 : i64} {
  func.func @_prologue_kernel(%arg0: i32, %arg1: memref<16x128xf32, #tpu.memory_space<vmem>>, %arg2: memref<128x128xbf16, #tpu.memory_space<vmem>>, %arg3: memref<16x128xf32, #tpu.memory_space<vmem>>) attributes {dimension_semantics = [#tpu.dimension_semantics<parallel>], iteration_bounds = array<i64: 1>, scalar_prefetch = 0 : i64, scratch_operands = 0 : i64, tpu.core_type = #tpu.core_type<tc>, window_params = [{transform_indices = @transform_0, window_bounds = array<i64: 16, 128>}, {pipeline_mode = #tpu.pipeline_mode<synchronous>, transform_indices = @transform_1, window_bounds = array<i64: 128, 128>}, {transform_indices = @transform_2, window_bounds = array<i64: 16, 128>}]} {
    %c0 = arith.constant 0 : index
    %c0_0 = arith.constant 0 : index
    %0 = vector.load %arg1[%c0, %c0_0] : memref<16x128xf32, #tpu.memory_space<vmem>>, vector<16x128xf32>
    %1 = tpu.iota {dimensions = array<i32: 1>} : vector<16x128xi32>
    %c0_i32 = arith.constant 0 : i32
    %2 = vector.broadcast %c0_i32 : i32 to vector<16x128xi32>
    %3 = arith.cmpi eq, %1, %2 : vector<16x128xi32>
    %cst = arith.constant 0.000000e+00 : f32
    %4 = vector.broadcast %cst : f32 to vector<16x128xf32>
    %5 = arith.select %3, %4, %0 : vector<16x128xi1>, vector<16x128xf32>
    %6 = arith.mulf %5, %5 : vector<16x128xf32>
    %cst_1 = arith.constant dense<0.000000e+00> : vector<16xf32>
    %7 = vector.multi_reduction <add>, %6, %cst_1 [1] : vector<16x128xf32> to vector<16xf32>
    %8 = vector.shape_cast %7 : vector<16xf32> to vector<16x1xf32>
    %cst_2 = arith.constant 1.000000e-16 : f32
    %9 = vector.broadcast %cst_2 : f32 to vector<16x1xf32>
    %10 = arith.maximumf %8, %9 : vector<16x1xf32>
    %11 = math.sqrt %10 : vector<16x1xf32>
    %12 = math.exp %11 : vector<16x1xf32>
    %13 = tpu.reciprocal %12 {approx = true} : vector<16x1xf32> -> vector<16x1xf32>
    %14 = arith.subf %12, %13 : vector<16x1xf32>
    %cst_3 = arith.constant 5.000000e-01 : f32
    %15 = vector.broadcast %cst_3 : f32 to vector<16x1xf32>
    %16 = arith.mulf %15, %14 : vector<16x1xf32>
    %17 = vector.broadcast %16 : vector<16x1xf32> to vector<16x128xf32>
    %18 = arith.mulf %17, %5 : vector<16x128xf32>
    %19 = vector.broadcast %11 : vector<16x1xf32> to vector<16x128xf32>
    %20 = arith.divf %18, %19 : vector<16x128xf32>
    %21 = arith.mulf %20, %20 : vector<16x128xf32>
    %cst_4 = arith.constant dense<0.000000e+00> : vector<16xf32>
    %22 = vector.multi_reduction <add>, %21, %cst_4 [1] : vector<16x128xf32> to vector<16xf32>
    %23 = vector.shape_cast %22 : vector<16xf32> to vector<16x1xf32>
    %cst_5 = arith.constant 1.000000e+00 : f32
    %24 = vector.broadcast %cst_5 : f32 to vector<16x1xf32>
    %25 = arith.addf %24, %23 : vector<16x1xf32>
    %26 = math.sqrt %25 : vector<16x1xf32>
    %c0_i32_6 = arith.constant 0 : i32
    %27 = vector.broadcast %c0_i32_6 : i32 to vector<16x128xi32>
    %28 = arith.cmpi eq, %1, %27 : vector<16x128xi32>
    %29 = vector.shape_cast %26 : vector<16x1xf32> to vector<16x1xf32>
    %30 = vector.broadcast %29 : vector<16x1xf32> to vector<16x128xf32>
    %31 = arith.select %28, %30, %20 : vector<16x128xi1>, vector<16x128xf32>
    %32 = arith.truncf %31 : vector<16x128xf32> to vector<16x128xbf16>
    %c0_7 = arith.constant 0 : index
    %c0_8 = arith.constant 0 : index
    %33 = vector.load %arg2[%c0_7, %c0_8] : memref<128x128xbf16, #tpu.memory_space<vmem>>, vector<128x128xbf16>
    %cst_9 = arith.constant dense<0.000000e+00> : vector<16x128xf32>
    %34 = tpu.matmul %32, %33, %cst_9 {dimension_numbers = #tpu.dot_dimension_numbers<[1], [0], [0], [1], [0, 0, 1, 1], [], []>} : vector<16x128xbf16>, vector<128x128xbf16>, vector<16x128xf32> -> vector<16x128xf32>
    %35 = tpu.iota {dimensions = array<i32: 1>} : vector<16x128xi32>
    %36 = vector.extract_strided_slice %34 {offsets = [0, 0], sizes = [16, 1], strides = [1, 1]} : vector<16x128xf32> to vector<16x1xf32>
    %cst_10 = arith.constant 0.000000e+00 : f32
    %37 = vector.broadcast %cst_10 : f32 to vector<16x1xf32>
    %38 = arith.subf %37, %36 : vector<16x1xf32>
    %39 = math.exp %38 : vector<16x1xf32>
    %cst_11 = arith.constant 1.000000e+00 : f32
    %40 = vector.broadcast %cst_11 : f32 to vector<16x1xf32>
    %41 = arith.addf %40, %39 : vector<16x1xf32>
    %cst_12 = arith.constant 1.000000e+00 : f32
    %42 = vector.broadcast %cst_12 : f32 to vector<16x1xf32>
    %43 = arith.divf %42, %41 : vector<16x1xf32>
    %cst_13 = arith.constant 1.000000e+01 : f32
    %44 = vector.broadcast %cst_13 : f32 to vector<16x1xf32>
    %45 = arith.mulf %43, %44 : vector<16x1xf32>
    %cst_14 = arith.constant 1.100000e+00 : f32
    %46 = vector.broadcast %cst_14 : f32 to vector<16x1xf32>
    %47 = arith.addf %45, %46 : vector<16x1xf32>
    %c0_i32_15 = arith.constant 0 : i32
    %48 = vector.broadcast %c0_i32_15 : i32 to vector<16x128xi32>
    %49 = arith.cmpi eq, %35, %48 : vector<16x128xi32>
    %50 = arith.mulf %34, %34 : vector<16x128xf32>
    %cst_16 = arith.constant 0.000000e+00 : f32
    %51 = vector.broadcast %cst_16 : f32 to vector<16x128xf32>
    %52 = arith.select %49, %51, %50 : vector<16x128xi1>, vector<16x128xf32>
    %cst_17 = arith.constant dense<0.000000e+00> : vector<16xf32>
    %53 = vector.multi_reduction <add>, %52, %cst_17 [1] : vector<16x128xf32> to vector<16xf32>
    %54 = vector.shape_cast %53 : vector<16xf32> to vector<16x1xf32>
    %55 = arith.mulf %47, %47 : vector<16x1xf32>
    %cst_18 = arith.constant 1.000000e+00 : f32
    %56 = vector.broadcast %cst_18 : f32 to vector<16x1xf32>
    %57 = arith.subf %55, %56 : vector<16x1xf32>
    %cst_19 = arith.constant 9.99999993E-9 : f32
    %58 = vector.broadcast %cst_19 : f32 to vector<16x1xf32>
    %59 = arith.maximumf %54, %58 : vector<16x1xf32>
    %60 = arith.divf %57, %59 : vector<16x1xf32>
    %c0_i32_20 = arith.constant 0 : i32
    %61 = vector.broadcast %c0_i32_20 : i32 to vector<16x128xi32>
    %62 = arith.cmpi eq, %35, %61 : vector<16x128xi32>
    %63 = math.sqrt %60 : vector<16x1xf32>
    %64 = vector.broadcast %63 : vector<16x1xf32> to vector<16x128xf32>
    %65 = arith.mulf %34, %64 : vector<16x128xf32>
    %66 = vector.shape_cast %47 : vector<16x1xf32> to vector<16x1xf32>
    %67 = vector.broadcast %66 : vector<16x1xf32> to vector<16x128xf32>
    %68 = arith.select %62, %67, %65 : vector<16x128xi1>, vector<16x128xf32>
    %c0_21 = arith.constant 0 : index
    %c0_22 = arith.constant 0 : index
    %69 = vector.load %arg3[%c0_21, %c0_22] : memref<16x128xf32, #tpu.memory_space<vmem>>, vector<16x128xf32>
    tpu.vector_store %arg3[%c0_21, %c0_22], %68 {strides = array<i32>} : memref<16x128xf32, #tpu.memory_space<vmem>>, vector<16x128xf32>,
    return
  }
  func.func @transform_0(%arg0: i32) -> (i32, i32) {
    %c0_i32 = arith.constant 0 : i32
    %c0_i32_0 = arith.constant 0 : i32
    return %arg0, %c0_i32 : i32, i32
  }
  func.func @transform_1(%arg0: i32) -> (i32, i32) {
    %c0_i32 = arith.constant 0 : i32
    %c0_i32_0 = arith.constant 0 : i32
    %c0_i32_1 = arith.constant 0 : i32
    return %c0_i32, %c0_i32_0 : i32, i32
  }
  func.func @transform_2(%arg0: i32) -> (i32, i32) {
    %c0_i32 = arith.constant 0 : i32
    %c0_i32_0 = arith.constant 0 : i32
    return %arg0, %c0_i32 : i32, i32
  }
}

</mosaic_0001>

<bundles_post_ra>
// kernel: tpu_custom_call.1
= control target key start
LH: loop header
LB: loop body
LE: loop exit
PB: predicated region body
PF: predicated region fallthrough
CT: control target
= control target key end

     0   :  { %7 = vsyncpa [#allocation3], 0  ;;  %s582_s0 = inlined_call_operand.hbm [shape: f32[16,128], index: 0, kind: input, shape index: {}]   ;;  %s583_s1 = inlined_call_operand.hbm [shape: bf16[128,128], index: 1, kind: input, shape index: {}]   ;;  %s584_s2 = inlined_call_operand.hbm [shape: f32[16,128], index: 2, kind: output, shape index: {}]  }
   0x1   :  { %8 = vsyncpa [#allocation6], 0 }
   0x2   :  { %9 = vsyncpa [#allocation4], 0  ;;  %s475_s9 = smov [#allocation2]   ;;  %s403_s13 = scalar_lea.hbm %s582_s0, 256 }
   0x3   :  { %s15_s10 = sshll.u32 %s475_s9, 4  ;;  %p404_p0 = scmp.ne.s32.totalorder %s582_s0, %s403_s13  ;;  %s16_s10 = int_to_ptr.vmem [resolvable:$true] %s15_s10 }
   0x4   :  { %p407_p1 = scmp.lt.u32.totalorder %s403_s13, %s582_s0 }
   0x6   :  { %p409_p2 = pnand %p407_p1, %p404_p0 }
   0x8   :  { %412 = shalt.err (!%p409_p2)
}
   0x9   :  { %s413_s18 = scalar_lea.vmem %s16_s10, 256  ;;  %p418_p4 = scmp.lt.s32.totalorder %s16_s10, %s16_s10 }
   0xa   :  { %p414_p3 = scmp.ne.s32.totalorder %s16_s10, %s413_s18  ;;  %p419_p5 = scmp.lt.s32.totalorder %s413_s18, %s413_s18 }
   0xc   :  { %p420_p6 = por %p419_p5, %p418_p4 }
   0xe   :  { %p421_p7 = pnand %p420_p6, %p414_p3 }
  0x10   :  { %424 = shalt.err (!%p421_p7)
}
  0x11   :  { %s476_s19 = smov 128   ;;  %s477_s20 = smov 8  }
  0x12   :  { %21 = dma.hbm_to_vmem [thread:$0]  %s582_s0, 256, %s16_s10, [#allocation3], %s476_s19, %s476_s19, %s477_s20  }
  0x13   :  { %s478_s23 = smov [#allocation5]   ;;  %s425_s27 = scalar_lea.hbm %s583_s1, 1024 }
  0x14   :  { %s27_s24 = sshll.u32 %s478_s23, 4  ;;  %p426_p8 = scmp.ne.s32.totalorder %s583_s1, %s425_s27  ;;  %s28_s24 = int_to_ptr.vmem [resolvable:$true] %s27_s24 }
  0x15   :  { %p429_p9 = scmp.lt.u32.totalorder %s425_s27, %s583_s1 }
  0x17   :  { %p431_p10 = pnand %p429_p9, %p426_p8 }
  0x19   :  { %434 = shalt.err (!%p431_p10)
}
  0x1a   :  { %s435_s4 = scalar_lea.vmem %s28_s24, 1024  ;;  %p440_p12 = scmp.lt.s32.totalorder %s28_s24, %s28_s24 }
  0x1b   :  { %p436_p11 = scmp.ne.s32.totalorder %s28_s24, %s435_s4  ;;  %p441_p13 = scmp.lt.s32.totalorder %s435_s4, %s435_s4 }
  0x1d   :  { %p442_p0 = por %p441_p13, %p440_p12 }
  0x1f   :  { %p443_p1 = pnand %p442_p0, %p436_p11 }
  0x21   :  { %446 = shalt.err (!%p443_p1)
}
  0x22   :  { %s479_s0 = smov 64   ;;  %s480_s5 = smov 4  }
  0x23   :  { %33 = dma.hbm_to_vmem [thread:$0]  %s583_s1, 1024, %s28_s24, [#allocation6], %s479_s0, %s479_s0, %s480_s5  }
  0x24   :  { %469 = dma.done.wait [#allocation3], 256  }
  0x25   :  { %470 = vsyncadd [#allocation3], 4294967040 }
  0x26   :  { %471 = dma.done.wait [#allocation6], 1024  }
  0x27   :  { %472 = vsyncadd [#allocation6], 4294966272  ;;  %v43_v0 = vlaneseq  ;;  %v41_v2 = vld [vmem:[#allocation2] sm:$0xff]  ;;  %v42_v3 = vld [vmem:[#allocation2 + $0x8] sm:$0xff]  ;;  %v481_v9 = vmov 0.0   ;;  %vm482_vm5 = vmmov 0  }
  0x28   :  { %v359_v8 = vld [vmem:[#allocation5] sm:$0xff]   ;;  %327 = vmatprep.subr.bf16.mxu0 %v481_v9  ;;  %v360_v10 = vld [vmem:[#allocation5 + $0x8] sm:$0xff]   ;;  %v361_v43 = vld [vmem:[#allocation5 + $0x10] sm:$0xff]   ;;  %343 = vmatprep.mubr.msk.bf16.mxu0 %vm482_vm5, %v481_v9  ;;  %s484_s1 = smov [#allocation7]  }
  0x29   :  { %v527_v1 = vand.u32 127, %v43_v0  ;;  %328 = vmatpush3.bf16.msra.mxu0 %v359_v8  ;;  %v362_v44 = vld [vmem:[#allocation5 + $0x18] sm:$0xff]   ;;  %v363_v45 = vld [vmem:[#allocation5 + $0x20] sm:$0xff]   ;;  %v364_v46 = vld [vmem:[#allocation5 + $0x28] sm:$0xff]   ;;  %s295_s8 = sshll.u32 %s484_s1, 4  ;;  %s296_s8 = int_to_ptr.vmem [resolvable:$true] %s295_s8 }
  0x2a   :  { %329 = vmatprep.subr.bf16.mxu0 %v481_v9  ;;  %v365_v47 = vld [vmem:[#allocation5 + $0x30] sm:$0xff]   ;;  %v366_v48 = vld [vmem:[#allocation5 + $0x38] sm:$0xff]   ;;  %s447_s9 = scalar_lea.vmem %s296_s8, 256  ;;  %p452_p3 = scmp.lt.s32.totalorder %s296_s8, %s296_s8 }
  0x2b   :  { %vm45_vm0 = vcmp.eq.s32.totalorder %v527_v1, 0  ;;  %p448_p2 = scmp.ne.s32.totalorder %s296_s8, %s447_s9  ;;  %p453_p4 = scmp.lt.s32.totalorder %s447_s9, %s447_s9 }
  0x2c   :  { %v46_v4 = vsel %vm45_vm0, 0.0, %v41_v2  ;;  %v47_v5 = vsel %vm45_vm0, 0.0, %v42_v3  ;;  %v483_v3 = vmov 0  }
  0x2d   :  { %v48_v6 = vmul.f32 %v46_v4, %v46_v4  ;;  %v49_v7 = vmul.f32 %v47_v5, %v47_v5  ;;  %330 = vmatpush3.bf16.msra.mxu0 %v360_v10  ;;  %358 = vset.pattern.permute.xlu1 %v483_v3  ;;  %p454_p5 = por %p453_p4, %p452_p3 }
  0x2e   :  { %331 = vmatprep.subr.bf16.mxu0 %v481_v9  ;;  %357 = vset.pattern.permute.xlu0 %v483_v3 }
  0x2f   :  { %50 = vadd.xlane.f32.xlu0 %v48_v6  ;;  %p455_p6 = pnand %p454_p5, %p448_p2 }
  0x31   :  { %332 = vmatpush3.bf16.msra.mxu0 %v361_v43 }
  0x32   :  { %333 = vmatprep.subr.bf16.mxu0 %v481_v9 }
  0x33   :  { %52 = vadd.xlane.f32.xlu0 %v49_v7 }
  0x35   :  { %334 = vmatpush3.bf16.msra.mxu0 %v362_v44 }
  0x36   :  { %335 = vmatprep.subr.bf16.mxu0 %v481_v9 }
  0x39   :  { %336 = vmatpush3.bf16.msra.mxu0 %v363_v45 }
  0x3a   :  { %337 = vmatprep.subr.bf16.mxu0 %v481_v9 }
  0x3d   :  { %338 = vmatpush3.bf16.msra.mxu0 %v364_v46 }
  0x3e   :  { %339 = vmatprep.subr.bf16.mxu0 %v481_v9 }
  0x41   :  { %340 = vmatpush3.bf16.msra.mxu0 %v365_v47 }
  0x42   :  { %341 = vmatprep.subr.bf16.mxu0 %v481_v9 }
  0x45   :  { %342 = vmatpush3.bf16.msra.mxu0 %v366_v48 }
  0xbc   :  { %v51_v11 = vpop.xlane.xlu0 %50 }
  0xbd   :  { %v54_v12 = vmax.f32 %v51_v11, 1e-16 }
  0xbf   :  { %367 = vrsqrt.f32 %v54_v12  ;;  %vm58_vm1 = vcmp.eq.f32.partialorder %v54_v12, inf  ;;  %v61_v17 = vand.u32 2147483648, %v54_v12  ;;  %vm60_vm2 = vcmp.eq.f32.partialorder %v54_v12, 0.0 }
  0xc0   :  { %v53_v13 = vpop.xlane.xlu0 %52 }
  0xc1   :  { %v55_v14 = vmax.f32 %v53_v13, 1e-16 }
  0xc3   :  { %369 = vrsqrt.f32 %v55_v14  ;;  %vm65_vm3 = vcmp.eq.f32.partialorder %v55_v14, inf  ;;  %v68_v23 = vand.u32 2147483648, %v55_v14  ;;  %vm67_vm4 = vcmp.eq.f32.partialorder %v55_v14, 0.0 }
  0xc9   :  { %v368_v15 = vpop.eup %367 }
  0xca   :  { %v57_v16 = vmul.f32 %v368_v15, %v54_v12 }
  0xcc   :  { %v59_v18 = vsel %vm58_vm1, %v54_v12, %v57_v16 }
  0xcd   :  { %v370_v19 = vpop.eup %369  ;;  %v62_v20 = vsel %vm60_vm2, %v61_v17, %v59_v18 }
  0xce   :  { %v64_v21 = vmul.f32 %v370_v19, %v55_v14  ;;  %v70_v22 = vmul.f32 1.442695, %v62_v20 }
  0xd0   :  { %371 = vpow2.f32 %v70_v22  ;;  %v66_v24 = vsel %vm65_vm3, %v55_v14, %v64_v21 }
  0xd1   :  { %v69_v25 = vsel %vm67_vm4, %v68_v23, %v66_v24 }
  0xd2   :  { %v72_v26 = vmul.f32 1.442695, %v69_v25 }
  0xd4   :  { %373 = vpow2.f32 %v72_v26 }
  0xda   :  { %v372_v27 = vpop.eup %371 }
  0xdb   :  { %375 = vrcp.f32 %v372_v27 }
  0xde   :  { %v374_v28 = vpop.eup %373 }
  0xdf   :  { %377 = vrcp.f32 %v374_v28 }
  0xe0   :  { %379 = vrcp.f32 %v62_v20 }
  0xe1   :  { %381 = vrcp.f32 %v69_v25 }
  0xe5   :  { %v376_v29 = vpop.eup %375 }
  0xe6   :  { %v76_v30 = vsub.f32 %v372_v27, %v376_v29 }
  0xe8   :  { %v78_v31 = vmul.f32 0.5, %v76_v30 }
  0xe9   :  { %v378_v32 = vpop.eup %377 }
  0xea   :  { %v80_v33 = vmul.f32 %v78_v31, %v46_v4  ;;  %v77_v34 = vsub.f32 %v374_v28, %v378_v32  ;;  %v380_v35 = vpop.eup %379 }
  0xeb   :  { %v382_v40 = vpop.eup %381 }
  0xec   :  { %v83_v36 = vmul.f32 %v380_v35, %v80_v33  ;;  %v79_v37 = vmul.f32 0.5, %v77_v34 }
  0xee   :  { %v86_v38 = vmul.f32 %v83_v36, %v83_v36  ;;  %v81_v39 = vmul.f32 %v79_v37, %v47_v5 }
  0xf0   :  { %88 = vadd.xlane.f32.xlu1 %v86_v38  ;;  %v85_v41 = vmul.f32 %v382_v40, %v81_v39 }
  0xf2   :  { %v87_v42 = vmul.f32 %v85_v41, %v85_v41 }
  0xf4   :  { %90 = vadd.xlane.f32.xlu1 %v87_v42 }
 0x17d   :  { %v89_v49 = vpop.xlane.xlu1 %88 }
 0x17e   :  { %v92_v50 = vadd.f32 1.0, %v89_v49 }
 0x180   :  { %383 = vrsqrt.f32 %v92_v50  ;;  %vm96_vm6 = vcmp.eq.f32.partialorder %v92_v50, inf  ;;  %v99_v57 = vand.u32 2147483648, %v92_v50  ;;  %vm98_vm7 = vcmp.eq.f32.partialorder %v92_v50, 0.0 }
 0x181   :  { %v91_v51 = vpop.xlane.xlu1 %90 }
 0x182   :  { %v93_v52 = vadd.f32 1.0, %v91_v51 }
 0x184   :  { %385 = vrsqrt.f32 %v93_v52  ;;  %vm103_vm8 = vcmp.eq.f32.partialorder %v93_v52, inf  ;;  %v106_v60 = vand.u32 2147483648, %v93_v52  ;;  %vm105_vm9 = vcmp.eq.f32.partialorder %v93_v52, 0.0 }
 0x18a   :  { %v384_v53 = vpop.eup %383 }
 0x18b   :  { %v95_v54 = vmul.f32 %v384_v53, %v92_v50 }
 0x18d   :  { %v97_v55 = vsel %vm96_vm6, %v92_v50, %v95_v54 }
 0x18e   :  { %v386_v56 = vpop.eup %385  ;;  %v100_v59 = vsel %vm98_vm7, %v99_v57, %v97_v55 }
 0x18f   :  { %v102_v58 = vmul.f32 %v386_v56, %v93_v52  ;;  %v108_v63 = vsel %vm45_vm0, %v100_v59, %v83_v36 }
 0x191   :  { %v104_v61 = vsel %vm103_vm8, %v93_v52, %v102_v58 }
 0x192   :  { %v107_v62 = vsel %vm105_vm9, %v106_v60, %v104_v61 }
 0x193   :  { %v109_v0 = vsel %vm45_vm0, %v107_v62, %v85_v41 }
 0x194   :  { %v110_v2 = vpack.c.bf16 %v109_v0, %v108_v63 }
 0x196   :  { %344 = vmatmul.mubr.bf16.vlgmr.msra.gmra.mrb[0].mxu0 %v110_v2 }
 0x269   :  { %v547_v4 = vpop.f32.mrb[0].mxu0 }
 0x26a   :  { %v216_v5 = vsub.f32 0.0, %v547_v4  ;;  %v345_v6 = vpop.f32.mrb[1].mxu0  ;;  %v232_v7 = vmul.f32 %v547_v4, %v547_v4 }
 0x26b   :  { %v552_v8 = vpop.f32.mrb[2].mxu0 }
 0x26c   :  { %v218_v9 = vmul.f32 1.442695, %v216_v5  ;;  %v346_v10 = vpop.f32.mrb[3].mxu0  ;;  %v234_v11 = vsel %vm45_vm0, 0.0, %v232_v7  ;;  %v233_v12 = vmul.f32 %v552_v8, %v552_v8  ;;  %v217_v19 = vsub.f32 0.0, %v552_v8 }
 0x26d   :  { %236 = vadd.xlane.f32.xlu0 %v234_v11 }
 0x26e   :  { %387 = vpow2.f32 %v218_v9  ;;  %v235_v13 = vsel %vm45_vm0, 0.0, %v233_v12  ;;  %v220_v20 = vmul.f32 1.442695, %v217_v19 }
 0x26f   :  { %238 = vadd.xlane.f32.xlu1 %v235_v13 }
 0x278   :  { %v388_v14 = vpop.eup %387 }
 0x279   :  { %v222_v15 = vadd.f32 1.0, %v388_v14 }
 0x27b   :  { %389 = vrcp.f32 %v222_v15 }
 0x27c   :  { %391 = vpow2.f32 %v220_v20 }
 0x285   :  { %v390_v16 = vpop.eup %389 }
 0x286   :  { %v228_v17 = vmul.f32 10.0, %v390_v16  ;;  %v392_v21 = vpop.eup %391 }
 0x287   :  { %v223_v22 = vadd.f32 1.0, %v392_v21 }
 0x288   :  { %v230_v18 = vadd.f32 1.1, %v228_v17 }
 0x289   :  { %393 = vrcp.f32 %v223_v22 }
 0x28a   :  { %278 = vperm.xlu1 %358, %v230_v18   ;;  %v240_v30 = vmul.f32 %v230_v18, %v230_v18 }
 0x28c   :  { %v316_v32 = vadd.f32 -1.0, %v240_v30 }
 0x293   :  { %v394_v23 = vpop.eup %393 }
 0x294   :  { %v229_v26 = vmul.f32 10.0, %v394_v23 }
 0x296   :  { %v231_v29 = vadd.f32 1.1, %v229_v26 }
 0x298   :  { %v241_v31 = vmul.f32 %v231_v29, %v231_v29 }
 0x29a   :  { %v317_v34 = vadd.f32 -1.0, %v241_v31 }
 0x2fa   :  { %v237_v24 = vpop.xlane.xlu0 %236 }
 0x2fb   :  { %v244_v25 = vmax.f32 %v237_v24, 1e-08 }
 0x2fc   :  { %v239_v27 = vpop.xlane.xlu1 %238 }
 0x2fd   :  { %395 = vrcp.f32 %v244_v25  ;;  %v245_v28 = vmax.f32 %v239_v27, 1e-08 }
 0x2ff   :  { %397 = vrcp.f32 %v245_v28 }
 0x307   :  { %v396_v33 = vpop.eup %395 }
 0x308   :  { %v247_v35 = vmul.f32 %v396_v33, %v316_v32 }
 0x309   :  { %v398_v36 = vpop.eup %397  ;;  %v279_v48 = vpop.permute.xlu1 %278 }
 0x30a   :  { %v249_v37 = vmul.f32 %v398_v36, %v317_v34  ;;  %399 = vrsqrt.f32 %v247_v35  ;;  %vm252_vm10 = vcmp.eq.f32.partialorder %v247_v35, inf  ;;  %v255_v41 = vand.u32 2147483648, %v247_v35 }
 0x30b   :  { %vm254_vm11 = vcmp.eq.f32.partialorder %v247_v35, 0.0 }
 0x30c   :  { %401 = vrsqrt.f32 %v249_v37  ;;  %vm259_vm12 = vcmp.eq.f32.partialorder %v249_v37, inf  ;;  %v262_v45 = vand.u32 2147483648, %v249_v37  ;;  %vm261_vm13 = vcmp.eq.f32.partialorder %v249_v37, 0.0 }
 0x314   :  { %v400_v38 = vpop.eup %399 }
 0x315   :  { %v251_v39 = vmul.f32 %v400_v38, %v247_v35 }
 0x316   :  { %v402_v40 = vpop.eup %401 }
 0x317   :  { %v253_v42 = vsel %vm252_vm10, %v247_v35, %v251_v39  ;;  %v258_v43 = vmul.f32 %v402_v40, %v249_v37 }
 0x318   :  { %v256_v44 = vsel %vm254_vm11, %v255_v41, %v253_v42 }
 0x319   :  { %266 = vperm.xlu0 %357, %v256_v44   ;;  %v260_v46 = vsel %vm259_vm12, %v249_v37, %v258_v43 }
 0x31a   :  { %v263_v47 = vsel %vm261_vm13, %v262_v45, %v260_v46 }
 0x31b   :  { %271 = vperm.xlu1 %358, %v263_v47  }
 0x31f   :  { %283 = vperm.xlu1 %358, %v231_v29  }
 0x398   :  { %v267_v49 = vpop.permute.xlu0 %266 }
 0x399   :  { %v274_v50 = vmul.f32 %v267_v49, %v547_v4 }
 0x39a   :  { %v272_v51 = vpop.permute.xlu1 %271 }
 0x39b   :  { %v286_v52 = vsel %vm45_vm0, %v279_v48, %v274_v50  ;;  %v275_v53 = vmul.f32 %v272_v51, %v552_v8 }
 0x39c   :  { %288 = vst [vmem:[#allocation7] sm:$0xff] %v286_v52 }
 0x39e   :  { %v284_v54 = vpop.permute.xlu1 %283 }
 0x39f   :  { %v287_v55 = vsel %vm45_vm0, %v284_v54, %v275_v53 }
 0x3a0   :  { %289 = vst [vmem:[#allocation7 + $0x8] sm:$0xff] %v287_v55 }
 0x3a1   :  { %458 = shalt.err (!%p455_p6)
}
 0x3a2   :  { %s459_s12 = scalar_lea.hbm %s584_s2, 256 }
 0x3a3   :  { %p460_p7 = scmp.ne.s32.totalorder %s584_s2, %s459_s12  ;;  %p463_p8 = scmp.lt.u32.totalorder %s459_s12, %s584_s2 }
 0x3a5   :  { %p465_p9 = pnand %p463_p8, %p460_p7 }
 0x3a7   :  { %468 = shalt.err (!%p465_p9)
}
 0x3a8   :  { %301 = dma.vmem_to_hbm [thread:$0]  %s296_s8, 256, %s584_s2, [#allocation4], %s476_s19, %s476_s19, %s477_s20  }
 0x3a9   :  { %473 = dma.done.wait [#allocation4], 256  }
 0x3aa   :  { %474 = vsyncadd [#allocation4], 4294967040 }
 0x3ab   :  { %305 = vsyncpa [#allocation3], 1 }
 0x3ac   :  { %306 = vsyncpa [#allocation6], 1 }
 0x3ad   :  { %307 = vsyncpa [#allocation4], 1 }

</bundles_post_ra>
